<compile_context>
chip_gen: v7x
topology: tpu7x:2x2x1
jax: 0.10.0
libtpu: 0.0.40
codegen_flags: <defaults>
</compile_context>

<pallas_src>
import functools

import jax
import jax.numpy as jnp
from jax.experimental import pallas as pl
from jax.experimental.pallas import tpu as pltpu


def _round_up(n, m):
    return ((n + m - 1) // m) * m


def simple_mlp_kernel(x_ref, ws_ref, w1_ref, b1_ref, w2_ref, b2_ref, out_ref,
                      *, mxu_score, mxu_pool, approx_recip):
    # x_ref: (TB, S, D) compute_dtype; ws_ref: (1, D) compute_dtype;
    # w1_ref: (D, H); b1_ref: (1, H) f32; w2_ref: (H, O_pad);
    # b2_ref: (1, O_pad) f32; out_ref: (TB, O_pad) f32.
    x = x_ref[...]                                  # stays in compute_dtype
    TB, S, D = x.shape

    # --- Attention scores (f32 result) ----------------------------------
    # b_score omitted on purpose: adding a constant along the softmax axis
    # does not change the softmax output.
    if mxu_score:
        # Large D: (TB*S, D) x (D, 1) on the (mostly idle) MXU instead of a
        # VPU broadcast-mul + XLU lane reduce over TB*S*D.
        x2d = x.reshape(TB * S, D)
        scores = jax.lax.dot_general(
            x2d, ws_ref[...],
            dimension_numbers=(((1,), (1,)), ((), ())),   # contract D with D
            preferred_element_type=jnp.float32,
        ).reshape(TB, S)
    else:
        # Small D: VPU multiply in compute_dtype, accumulate in f32.
        ws = ws_ref[...].reshape(1, 1, D)
        scores = jnp.sum(x * ws, axis=-1, dtype=jnp.float32)         # (TB, S)

    # --- Softmax over the sequence axis (f32 math on tiny (TB,S) arrays) ---
    m = jnp.max(scores, axis=-1, keepdims=True)
    e = jnp.exp(scores - m)
    denom = jnp.sum(e, axis=-1, keepdims=True)
    # EUP approximate reciprocal on the bf16 fast path; precise on the f32 path.
    w = e * pl.reciprocal(denom, approx=approx_recip)                # (TB, S)

    # --- Weighted pooling over the sequence axis -> (TB, D) f32 ----------
    if mxu_pool:
        # Large S: MXU contraction 'bs,bsd->bd' (expressed with a singleton
        # q-dim), avoids a (TB,S,D) elementwise temporary and a cross-sublane
        # XLU reduce over S.
        pooled = jnp.einsum(
            "bqs,bsd->bqd", w[:, None, :].astype(x.dtype), x,
            preferred_element_type=jnp.float32)[:, 0, :]
    else:
        # Small S: VPU multiply in compute_dtype, accumulate in f32.
        # TODO(synk): for mid-sized S*D that stays on the VPU, chunk over S
        # with lax.fori_loop(unroll=True) to bound vreg live ranges.
        pooled = jnp.sum(x * w[:, :, None].astype(x.dtype), axis=1,
                         dtype=jnp.float32)

    # --- MLP: Linear -> ReLU -> (Dropout = identity in eval) -> Linear ---
    h = jnp.dot(pooled.astype(w1_ref.dtype), w1_ref[...],
                preferred_element_type=jnp.float32) + b1_ref[...]     # (TB, H)
    h = jnp.maximum(h, 0.0)
    out = jnp.dot(h.astype(w2_ref.dtype), w2_ref[...],
                  preferred_element_type=jnp.float32) + b2_ref[...]   # (TB, O_pad)

    out_ref[...] = out.astype(out_ref.dtype)


def _tpu_hw_info():
    """(device_kind lowercased, vmem_capacity_bytes) with safe fallbacks."""
    kind = ""
    try:
        kind = jax.devices()[0].device_kind.lower()
    except Exception:
        pass
    vmem = None
    try:
        vmem = int(pltpu.get_tpu_info().vmem_capacity_bytes)
    except Exception:
        vmem = None
    if vmem is None:
        # v5e / v6e have 128 MiB of VMEM; be conservative (v7x-sized) otherwise.
        vmem = 128 * 1024 * 1024 if ("v5" in kind or "v6" in kind) else 64 * 1024 * 1024
    return kind, vmem


def _resident_spec(shape):
    """Whole-array, grid-invariant parameter block; single-buffered since it is
    never refetched across grid steps (halves its resident VMEM)."""
    index_map = lambda b: (0,) * len(shape)
    if hasattr(pl, "Buffered"):
        try:
            return pl.BlockSpec(shape, index_map, pipeline_mode=pl.Buffered(1))
        except TypeError:
            pass
    return pl.BlockSpec(shape, index_map)


@functools.partial(jax.jit, static_argnames=("block_b", "compute_dtype"))
def simple_mlp_forward(x, seq_lengths, params, *, block_b=None,
                       compute_dtype=jnp.bfloat16):
    """x: (B, S, D). seq_lengths accepted but unused (matches the PyTorch forward)."""
    # TODO(synk): the PyTorch forward ignores seq_lengths (no length masking);
    # if masked softmax is ever needed it must be added here and in the kernel.
    del seq_lengths
    B, S, D = x.shape
    H = params["w1"].shape[1]
    O = params["w2"].shape[1]

    kind, vmem_cap = _tpu_hw_info()
    is_v7x = ("7" in kind) or (vmem_cap <= 64 * 1024 * 1024)

    # --- generation-dependent batch tile --------------------------------
    if block_b is None:
        # v6e: 2x256x256 MXU + 128 MiB VMEM -> 256-row tiles pay off at large B.
        # v5e (4x128x128 MXU) and v7x (64 MiB VMEM): 128-row tiles.
        block_b = 256 if ("v6" in kind and B >= 256) else 128
        block_b = min(block_b, _round_up(B, 8))
        if is_v7x:
            # v7x has 2 TensorCores sharing HBM: make sure the ("parallel",)
            # grid has >= 2 steps so both cores get work.
            while _round_up(B, block_b) // block_b < 2 and block_b > 8:
                block_b = max(8, _round_up(block_b // 2, 8))
    block_b = _round_up(block_b, 8)
    B_pad = _round_up(B, block_b)
    # Lane-dense output: pad O to a multiple of 128 so stores are unmasked vst.
    O_pad = _round_up(O, 128)

    # VMEM budget: ~100 MiB on 128 MiB parts (v5e/v6e), 48 MiB on 64 MiB (v7x).
    vmem_limit = 100 * 1024 * 1024 if vmem_cap >= 128 * 1024 * 1024 else 48 * 1024 * 1024

    # MXU-vs-VPU gates for the score / pooling contractions.
    # v5e's VPU/EUP have no native bf16 -> push work to the MXU earlier there.
    if "v5" in kind:
        score_min_d, pool_min_s = 128, 32
    else:
        score_min_d, pool_min_s = 256, 64
    mxu_score = D >= score_min_d
    mxu_pool = S >= pool_min_s
    approx_recip = jnp.dtype(compute_dtype) != jnp.dtype(jnp.float32)

    xb = x.astype(compute_dtype)
    if B_pad != B:
        xb = jnp.pad(xb, ((0, B_pad - B), (0, 0), (0, 0)))

    ws = params["w_score"].reshape(1, D).astype(compute_dtype)    # (1, D) row
    w1 = params["w1"].astype(compute_dtype)
    b1 = params["b1"].astype(jnp.float32)
    w2 = params["w2"].astype(compute_dtype)
    b2 = params["b2"].astype(jnp.float32)
    if O_pad != O:
        w2 = jnp.pad(w2, ((0, 0), (0, O_pad - O)))
        b2 = jnp.pad(b2, ((0, 0), (0, O_pad - O)))

    kernel = functools.partial(simple_mlp_kernel, mxu_score=mxu_score,
                               mxu_pool=mxu_pool, approx_recip=approx_recip)

    out = pl.pallas_call(
        kernel,
        out_shape=jax.ShapeDtypeStruct((B_pad, O_pad), jnp.float32),
        grid_spec=pltpu.PrefetchScalarGridSpec(
            num_scalar_prefetch=0,
            grid=(B_pad // block_b,),
            in_specs=[
                pl.BlockSpec((block_b, S, D), lambda b: (b, 0, 0)),  # x tile
                _resident_spec((1, D)),        # w_score row (single-buffered)
                _resident_spec((D, H)),        # w1
                _resident_spec((1, H)),        # b1
                _resident_spec((H, O_pad)),    # w2 (O padded to 128)
                _resident_spec((1, O_pad)),    # b2 (O padded to 128)
            ],
            out_specs=pl.BlockSpec((block_b, O_pad), lambda b: (b, 0)),
        ),
        compiler_params=pltpu.CompilerParams(
            dimension_semantics=("parallel",),     # megacore-shard batch tiles
            vmem_limit_bytes=vmem_limit,
        ),
    )(xb, ws, w1, b1, w2, b2)

    return out[:B, :O]


def init_params(key, input_size, hidden_size, output_size):
    ks = jax.random.split(key, 6)
    scale = 0.1
    return {
        "w_score": scale * jax.random.normal(ks[0], (input_size, 1), jnp.float32),
        "b_score": scale * jax.random.normal(ks[1], (1, 1), jnp.float32),
        "w1": scale * jax.random.normal(ks[2], (input_size, hidden_size), jnp.float32),
        "b1": scale * jax.random.normal(ks[3], (1, hidden_size), jnp.float32),
        "w2": scale * jax.random.normal(ks[4], (hidden_size, output_size), jnp.float32),
        "b2": scale * jax.random.normal(ks[5], (1, output_size), jnp.float32),
    }


def reference_forward(x, params):
    # Pure-JAX reference mirroring the PyTorch module (eval mode).
    scores = jnp.einsum("bsd,do->bso", x, params["w_score"]) + params["b_score"][0, 0]
    weights = jax.nn.softmax(scores, axis=1)
    pooled = jnp.sum(x * weights, axis=1)                        # (B, D)
    h = jnp.maximum(pooled @ params["w1"] + params["b1"], 0.0)
    return h @ params["w2"] + params["b2"]


if __name__ == "__main__":
    # TODO(synk): nn.Dropout has no inference-time effect; training-mode dropout
    # (random masking) is intentionally not implemented in the kernel.
    key = jax.random.PRNGKey(0)
    k_x1, k_x2, k_x3, k_p, k_p3 = jax.random.split(key, 5)

    # Case 1: tiny batch (B=2 padded to one 8-row tile), exact f32 path,
    # VPU score/pool branches (small D, small S).
    D, H, O, S = 32, 32, 16, 8
    params = init_params(k_p, D, H, O)
    B1 = 2
    x1 = jax.random.normal(k_x1, (B1, S, D), jnp.float32)
    sl1 = jnp.full((B1,), S, jnp.int32)   # unused, as in the PyTorch forward
    out1 = jax.block_until_ready(
        simple_mlp_forward(x1, sl1, params, compute_dtype=jnp.float32))
    ref1 = reference_forward(x1, params)
    assert out1.shape == (B1, O)
    assert jnp.allclose(out1, ref1, atol=1e-2, rtol=1e-2), (out1, ref1)

    # Case 2: multi-tile grid (B=20, TB=8 -> 3 grid steps), bf16 fast path,
    # VPU score/pool branches.
    B2 = 20
    x2 = jax.random.normal(k_x2, (B2, S, D), jnp.float32)
    sl2 = jnp.full((B2,), S, jnp.int32)
    out2 = jax.block_until_ready(
        simple_mlp_forward(x2, sl2, params, block_b=8, compute_dtype=jnp.bfloat16))
    ref2 = reference_forward(x2, params)
    assert out2.shape == (B2, O)
    assert jnp.allclose(out2, ref2, atol=5e-2, rtol=5e-2), (out2, ref2)

    # Case 3: production-like D/S (D=256, S=64) -> exercises the MXU score
    # projection and the MXU pooling contraction, bf16 fast path, 2-step grid.
    D3, H3, O3, S3, B3 = 256, 64, 16, 64, 16
    params3 = init_params(k_p3, D3, H3, O3)
    x3 = jax.random.normal(k_x3, (B3, S3, D3), jnp.float32)
    sl3 = jnp.full((B3,), S3, jnp.int32)
    out3 = jax.block_until_ready(
        simple_mlp_forward(x3, sl3, params3, block_b=8, compute_dtype=jnp.bfloat16))
    ref3 = reference_forward(x3, params3)
    assert out3.shape == (B3, O3)
    assert jnp.allclose(out3, ref3, atol=1e-1, rtol=1e-1), (out3, ref3)

    print("KERNEL_OK")
</pallas_src>

<mosaic_0001>
module attributes {stable_mosaic.version = 11 : i64} {
  func.func @simple_mlp_kernel(%arg0: i32, %arg1: memref<8x8x32xf32, #tpu.memory_space<vmem>>, %arg2: memref<1x32xf32, #tpu.memory_space<vmem>>, %arg3: memref<32x32xf32, #tpu.memory_space<vmem>>, %arg4: memref<1x32xf32, #tpu.memory_space<vmem>>, %arg5: memref<32x128xf32, #tpu.memory_space<vmem>>, %arg6: memref<1x128xf32, #tpu.memory_space<vmem>>, %arg7: memref<8x128xf32, #tpu.memory_space<vmem>>) attributes {dimension_semantics = [#tpu.dimension_semantics<parallel>], iteration_bounds = array<i64: 1>, scalar_prefetch = 0 : i64, scratch_operands = 0 : i64, tpu.core_type = #tpu.core_type<tc>, window_params = [{transform_indices = @transform_0, window_bounds = array<i64: 8, 8, 32>}, {pipeline_mode = #tpu.pipeline_mode<synchronous>, transform_indices = @transform_1, window_bounds = array<i64: 1, 32>}, {pipeline_mode = #tpu.pipeline_mode<synchronous>, transform_indices = @transform_2, window_bounds = array<i64: 32, 32>}, {pipeline_mode = #tpu.pipeline_mode<synchronous>, transform_indices = @transform_3, window_bounds = array<i64: 1, 32>}, {pipeline_mode = #tpu.pipeline_mode<synchronous>, transform_indices = @transform_4, window_bounds = array<i64: 32, 128>}, {pipeline_mode = #tpu.pipeline_mode<synchronous>, transform_indices = @transform_5, window_bounds = array<i64: 1, 128>}, {transform_indices = @transform_6, window_bounds = array<i64: 8, 128>}]} {
    %c0 = arith.constant 0 : index
    %c0_0 = arith.constant 0 : index
    %c0_1 = arith.constant 0 : index
    %0 = vector.load %arg1[%c0, %c0_0, %c0_1] : memref<8x8x32xf32, #tpu.memory_space<vmem>>, vector<8x8x32xf32>
    %c0_2 = arith.constant 0 : index
    %c0_3 = arith.constant 0 : index
    %1 = vector.load %arg2[%c0_2, %c0_3] : memref<1x32xf32, #tpu.memory_space<vmem>>, vector<1x32xf32>
    %2 = vector.shape_cast %1 : vector<1x32xf32> to vector<1x1x32xf32>
    %3 = vector.broadcast %2 : vector<1x1x32xf32> to vector<8x8x32xf32>
    %4 = arith.mulf %0, %3 : vector<8x8x32xf32>
    %cst = arith.constant dense<0.000000e+00> : vector<8x8xf32>
    %5 = vector.multi_reduction <add>, %4, %cst [2] : vector<8x8x32xf32> to vector<8x8xf32>
    %cst_4 = arith.constant dense<0xFF800000> : vector<8xf32>
    %6 = vector.multi_reduction <maximumf>, %5, %cst_4 [1] : vector<8x8xf32> to vector<8xf32>
    %7 = vector.shape_cast %6 : vector<8xf32> to vector<8x1xf32>
    %8 = vector.broadcast %7 : vector<8x1xf32> to vector<8x8xf32>
    %9 = arith.subf %5, %8 : vector<8x8xf32>
    %10 = math.exp %9 : vector<8x8xf32>
    %cst_5 = arith.constant dense<0.000000e+00> : vector<8xf32>
    %11 = vector.multi_reduction <add>, %10, %cst_5 [1] : vector<8x8xf32> to vector<8xf32>
    %12 = vector.shape_cast %11 : vector<8xf32> to vector<8x1xf32>
    %13 = tpu.reciprocal %12 : vector<8x1xf32> -> vector<8x1xf32>
    %14 = vector.broadcast %13 : vector<8x1xf32> to vector<8x8xf32>
    %15 = arith.mulf %10, %14 : vector<8x8xf32>
    %16 = vector.shape_cast %15 : vector<8x8xf32> to vector<8x8x1xf32>
    %17 = vector.broadcast %16 : vector<8x8x1xf32> to vector<8x8x32xf32>
    %18 = arith.mulf %0, %17 : vector<8x8x32xf32>
    %cst_6 = arith.constant dense<0.000000e+00> : vector<8x32xf32>
    %19 = vector.multi_reduction <add>, %18, %cst_6 [1] : vector<8x8x32xf32> to vector<8x32xf32>
    %c0_7 = arith.constant 0 : index
    %c0_8 = arith.constant 0 : index
    %20 = vector.load %arg3[%c0_7, %c0_8] : memref<32x32xf32, #tpu.memory_space<vmem>>, vector<32x32xf32>
    %cst_9 = arith.constant dense<0.000000e+00> : vector<8x32xf32>
    %21 = tpu.matmul %19, %20, %cst_9 {dimension_numbers = #tpu.dot_dimension_numbers<[1], [0], [0], [1], [0, 0, 1, 1], [], []>} : vector<8x32xf32>, vector<32x32xf32>, vector<8x32xf32> -> vector<8x32xf32>
    %c0_10 = arith.constant 0 : index
    %c0_11 = arith.constant 0 : index
    %22 = vector.load %arg4[%c0_10, %c0_11] : memref<1x32xf32, #tpu.memory_space<vmem>>, vector<1x32xf32>
    %23 = vector.broadcast %22 : vector<1x32xf32> to vector<8x32xf32>
    %24 = arith.addf %21, %23 : vector<8x32xf32>
    %cst_12 = arith.constant 0.000000e+00 : f32
    %25 = vector.broadcast %cst_12 : f32 to vector<8x32xf32>
    %26 = arith.maximumf %24, %25 : vector<8x32xf32>
    %c0_13 = arith.constant 0 : index
    %c0_14 = arith.constant 0 : index
    %27 = vector.load %arg5[%c0_13, %c0_14] : memref<32x128xf32, #tpu.memory_space<vmem>>, vector<32x128xf32>
    %cst_15 = arith.constant dense<0.000000e+00> : vector<8x128xf32>
    %28 = tpu.matmul %26, %27, %cst_15 {dimension_numbers = #tpu.dot_dimension_numbers<[1], [0], [0], [1], [0, 0, 1, 1], [], []>} : vector<8x32xf32>, vector<32x128xf32>, vector<8x128xf32> -> vector<8x128xf32>
    %c0_16 = arith.constant 0 : index
    %c0_17 = arith.constant 0 : index
    %29 = vector.load %arg6[%c0_16, %c0_17] : memref<1x128xf32, #tpu.memory_space<vmem>>, vector<1x128xf32>
    %30 = vector.broadcast %29 : vector<1x128xf32> to vector<8x128xf32>
    %31 = arith.addf %28, %30 : vector<8x128xf32>
    %c0_18 = arith.constant 0 : index
    %c0_19 = arith.constant 0 : index
    %32 = vector.load %arg7[%c0_18, %c0_19] : memref<8x128xf32, #tpu.memory_space<vmem>>, vector<8x128xf32>
    tpu.vector_store %arg7[%c0_18, %c0_19], %31 {strides = array<i32>} : memref<8x128xf32, #tpu.memory_space<vmem>>, vector<8x128xf32>,
    return
  }
  func.func @transform_0(%arg0: i32) -> (i32, i32, i32) {
    %c0_i32 = arith.constant 0 : i32
    %c0_i32_0 = arith.constant 0 : i32
    %c0_i32_1 = arith.constant 0 : i32
    return %arg0, %c0_i32, %c0_i32_0 : i32, i32, i32
  }
  func.func @transform_1(%arg0: i32) -> (i32, i32) {
    %c0_i32 = arith.constant 0 : i32
    %c0_i32_0 = arith.constant 0 : i32
    %c0_i32_1 = arith.constant 0 : i32
    return %c0_i32, %c0_i32_0 : i32, i32
  }
  func.func @transform_2(%arg0: i32) -> (i32, i32) {
    %c0_i32 = arith.constant 0 : i32
    %c0_i32_0 = arith.constant 0 : i32
    %c0_i32_1 = arith.constant 0 : i32
    return %c0_i32, %c0_i32_0 : i32, i32
  }
  func.func @transform_3(%arg0: i32) -> (i32, i32) {
    %c0_i32 = arith.constant 0 : i32
    %c0_i32_0 = arith.constant 0 : i32
    %c0_i32_1 = arith.constant 0 : i32
    return %c0_i32, %c0_i32_0 : i32, i32
  }
  func.func @transform_4(%arg0: i32) -> (i32, i32) {
    %c0_i32 = arith.constant 0 : i32
    %c0_i32_0 = arith.constant 0 : i32
    %c0_i32_1 = arith.constant 0 : i32
    return %c0_i32, %c0_i32_0 : i32, i32
  }
  func.func @transform_5(%arg0: i32) -> (i32, i32) {
    %c0_i32 = arith.constant 0 : i32
    %c0_i32_0 = arith.constant 0 : i32
    %c0_i32_1 = arith.constant 0 : i32
    return %c0_i32, %c0_i32_0 : i32, i32
  }
  func.func @transform_6(%arg0: i32) -> (i32, i32) {
    %c0_i32 = arith.constant 0 : i32
    %c0_i32_0 = arith.constant 0 : i32
    return %arg0, %c0_i32 : i32, i32
  }
}

</mosaic_0001>

<bundles_post_ra>
// kernel: simple_mlp_forward.1
= control target key start
LH: loop header
LB: loop body
LE: loop exit
PB: predicated region body
PF: predicated region fallthrough
CT: control target
= control target key end

     0   :  { %vm46_vm0 = vcmask 261120   ;;  %v79_v25 = vlaneseq  ;;  %vm113_vm1 = vcmask 1041409   ;;  %vm115_vm2 = vcmask 1042434   ;;  %s920_s0 = inlined_call_operand.vmem [shape: f32[8,8,32], index: 0, kind: input, shape index: {}]   ;;  %s921_s1 = inlined_call_operand.vmem [shape: f32[1,32], index: 1, kind: input, shape index: {}]   ;;  %s922_s2 = inlined_call_operand.vmem [shape: f32[32,32], index: 2, kind: input, shape index: {}]   ;;  %s923_s4 = inlined_call_operand.vmem [shape: f32[32,128], index: 4, kind: input, shape index: {}]   ;;  %s924_s3 = inlined_call_operand.vmem [shape: f32[1,32], index: 3, kind: input, shape index: {}]   ;;  %s925_s5 = inlined_call_operand.vmem [shape: f32[1,128], index: 5, kind: input, shape index: {}]   ;;  %s926_s6 = inlined_call_operand.vmem [shape: f32[8,128], index: 6, kind: output, shape index: {}]  }
   0x1   :  { %v729_v0 = vld [vmem:[%s920_s0] sm:$0xff]  ;;  %v737_v2 = vld [vmem:[%s920_s0 + $0x10] sm:$0xff]  ;;  %v744_v5 = vld [vmem:[%s920_s0 + $0x8] sm:$0xff]  ;;  %vm117_vm3 = vcmask 1043459   ;;  %vm119_vm4 = vcmask 1044484   ;;  %vm121_vm5 = vcmask 1045509  }
   0x2   :  { %v614_v1 = vld [vmem:[%s921_s1] ss:$0 sm:$0xff]  ;;  %v749_v6 = vld [vmem:[%s920_s0 + $0x18] sm:$0xff]  ;;  %v761_v10 = vld [vmem:[%s920_s0 + $0x28] sm:$0xff]  ;;  %v80_v26 = vand.u32 127, %v79_v25  ;;  %v785_v27 = vshrl.u32 %v79_v25, 7 }
   0x3   :  { %v38_v3 = vmul.f32 %v614_v1, %v729_v0  ;;  %v40_v4 = vmul.f32 %v614_v1, %v737_v2  ;;  %v39_v7 = vmul.f32 %v614_v1, %v744_v5  ;;  %v41_v8 = vmul.f32 %v614_v1, %v749_v6  ;;  %v756_v9 = vld [vmem:[%s920_s0 + $0x20] sm:$0xff]  ;;  %v772_v17 = vld [vmem:[%s920_s0 + $0x30] sm:$0xff]  ;;  %v777_v18 = vld [vmem:[%s920_s0 + $0x38] sm:$0xff] }
   0x4   :  { %v42_v15 = vmul.f32 %v614_v1, %v756_v9  ;;  %v43_v16 = vmul.f32 %v614_v1, %v761_v10  ;;  %v44_v21 = vmul.f32 %v614_v1, %v772_v17  ;;  %v45_v22 = vmul.f32 %v614_v1, %v777_v18 }
   0x5   :  { %v47_v11 = vsel %vm46_vm0, %v38_v3, 0.0  ;;  %v53_v12 = vsel %vm46_vm0, %v40_v4, 0.0  ;;  %v50_v13 = vsel %vm46_vm0, %v39_v7, 0.0  ;;  %v56_v14 = vsel %vm46_vm0, %v41_v8, 0.0 }
   0x6   :  { %48 = vadd.xlane.f32.xlu0 %v47_v11  ;;  %54 = vadd.xlane.f32.xlu1 %v53_v12  ;;  %v59_v19 = vsel %vm46_vm0, %v42_v15, 0.0  ;;  %v62_v20 = vsel %vm46_vm0, %v43_v16, 0.0  ;;  %v65_v23 = vsel %vm46_vm0, %v44_v21, 0.0  ;;  %v68_v24 = vsel %vm46_vm0, %v45_v22, 0.0 }
   0x7   :  { %v788_v30 = vsub.s32 %v80_v26, %v785_v27  ;;  %vm123_vm6 = vcmask 1046534   ;;  %vm125_vm7 = vcmask 1047559   ;;  %vm128_vm8 = vcmask 64512  }
   0x8   :  { %v687_v53 = vmov 0   ;;  %v135_v54 = vsub.s32 0, %v785_v27  ;;  %v139_v55 = vsub.s32 1, %v785_v27  ;;  %v143_v56 = vsub.s32 2, %v785_v27 }
   0x9   :  { %668 = vset.pattern.permute.xlu0 %v687_v53  ;;  %667 = vset.pattern.permute.xlu1 %v687_v53  ;;  %v147_v57 = vsub.s32 3, %v785_v27  ;;  %v151_v62 = vsub.s32 4, %v785_v27  ;;  %v155_v11 = vsub.s32 5, %v785_v27  ;;  %v159_v15 = vsub.s32 6, %v785_v27 }
   0xa   :  { %51 = vadd.xlane.f32.xlu0 %v50_v13  ;;  %57 = vadd.xlane.f32.xlu1 %v56_v14  ;;  %v163_v21 = vsub.s32 7, %v785_v27  ;;  %v429_v27 = vld [vmem:[%s922_s2 + $0x18] sm:$0xff]  ;;  %vm689_vm9 = vmmov 0  }
   0xe   :  { %60 = vadd.xlane.f32.xlu0 %v59_v19  ;;  %63 = vadd.xlane.f32.xlu1 %v62_v20 }
  0x12   :  { %66 = vadd.xlane.f32.xlu0 %v65_v23  ;;  %69 = vadd.xlane.f32.xlu1 %v68_v24 }
  0x93   :  { %v49_v28 = vpop.xlane.xlu0 %48  ;;  %v55_v29 = vpop.xlane.xlu1 %54 }
  0x94   :  { %v84_v33 = vrot.slane %v49_v28, %v788_v30  ;;  %v92_v36 = vrot.slane %v55_v29, %v788_v30 }
  0x97   :  { %v52_v31 = vpop.xlane.xlu0 %51  ;;  %v58_v32 = vpop.xlane.xlu1 %57 }
  0x98   :  { %v88_v34 = vrot.slane %v52_v31, %v788_v30  ;;  %v96_v35 = vrot.slane %v58_v32, %v788_v30 }
  0x9a   :  { %v114_v37 = vsel %vm113_vm1, %v88_v34, %v84_v33 }
  0x9b   :  { %v116_v38 = vsel %vm115_vm2, %v92_v36, %v114_v37  ;;  %v61_v39 = vpop.xlane.xlu0 %60  ;;  %v64_v40 = vpop.xlane.xlu1 %63 }
  0x9c   :  { %v118_v41 = vsel %vm117_vm3, %v96_v35, %v116_v38  ;;  %v100_v42 = vrot.slane %v61_v39, %v788_v30  ;;  %v104_v43 = vrot.slane %v64_v40, %v788_v30 }
  0x9e   :  { %v120_v44 = vsel %vm119_vm4, %v100_v42, %v118_v41 }
  0x9f   :  { %v67_v45 = vpop.xlane.xlu0 %66  ;;  %v70_v46 = vpop.xlane.xlu1 %69  ;;  %v122_v49 = vsel %vm121_vm5, %v104_v43, %v120_v44 }
  0xa0   :  { %v108_v47 = vrot.slane %v67_v45, %v788_v30  ;;  %v112_v48 = vrot.slane %v70_v46, %v788_v30 }
  0xa2   :  { %v124_v50 = vsel %vm123_vm6, %v108_v47, %v122_v49 }
  0xa3   :  { %v126_v51 = vsel %vm125_vm7, %v112_v48, %v124_v50 }
  0xa4   :  { %v129_v52 = vsel %vm128_vm8, %v126_v51, -inf }
  0xa5   :  { %130 = vmax.xlane.f32.xlu0 %v129_v52 }
 0x132   :  { %v131_v58 = vpop.xlane.xlu0 %130 }
 0x133   :  { %v136_v59 = vrot.slane %v131_v58, %v135_v54  ;;  %v140_v60 = vrot.slane %v131_v58, %v139_v55  ;;  %v144_v61 = vrot.slane %v131_v58, %v143_v56  ;;  %v148_v63 = vrot.slane %v131_v58, %v147_v57 }
 0x134   :  { %v152_v12 = vrot.slane %v131_v58, %v151_v62  ;;  %v156_v16 = vrot.slane %v131_v58, %v155_v11  ;;  %v160_v22 = vrot.slane %v131_v58, %v159_v15 }
 0x135   :  { %v173_v1 = vsub.f32 %v49_v28, %v136_v59  ;;  %v174_v3 = vsub.f32 %v52_v31, %v140_v60  ;;  %v175_v4 = vsub.f32 %v55_v29, %v144_v61  ;;  %v176_v13 = vsub.f32 %v58_v32, %v148_v63 }
 0x136   :  { %v177_v19 = vsub.f32 %v61_v39, %v152_v12  ;;  %v178_v23 = vsub.f32 %v64_v40, %v156_v16  ;;  %v164_v28 = vrot.slane %v131_v58, %v163_v21  ;;  %v179_v29 = vsub.f32 %v67_v45, %v160_v22 }
 0x137   :  { %v181_v7 = vmul.f32 1.442695, %v173_v1  ;;  %v183_v8 = vmul.f32 1.442695, %v174_v3  ;;  %v185_v14 = vmul.f32 1.442695, %v175_v4 }
 0x138   :  { %v187_v20 = vmul.f32 1.442695, %v176_v13  ;;  %v189_v24 = vmul.f32 1.442695, %v177_v19  ;;  %v191_v31 = vmul.f32 1.442695, %v178_v23  ;;  %v180_v33 = vsub.f32 %v70_v46, %v164_v28 }
 0x139   :  { %669 = vpow2.f32 %v181_v7  ;;  %v193_v34 = vmul.f32 1.442695, %v179_v29 }
 0x13a   :  { %671 = vpow2.f32 %v183_v8  ;;  %v195_v36 = vmul.f32 1.442695, %v180_v33 }
 0x13b   :  { %673 = vpow2.f32 %v185_v14 }
 0x13c   :  { %675 = vpow2.f32 %v187_v20 }
 0x13d   :  { %677 = vpow2.f32 %v189_v24 }
 0x13e   :  { %679 = vpow2.f32 %v191_v31 }
 0x13f   :  { %681 = vpow2.f32 %v193_v34 }
 0x140   :  { %683 = vpow2.f32 %v195_v36  ;;  %v526_v36 = vld [vmem:[%s923_s4 + $0x8] sm:$0xff] }
 0x143   :  { %v670_v25 = vpop.eup %669 }
 0x144   :  { %v672_v26 = vpop.eup %671  ;;  %206 = vperm.xlu1 %667, %v670_v25  }
 0x145   :  { %209 = vperm.xlu0 %668, %v672_v26   ;;  %v674_v32 = vpop.eup %673 }
 0x146   :  { %v676_v35 = vpop.eup %675 }
 0x147   :  { %v678_v37 = vpop.eup %677 }
 0x148   :  { %212 = vperm.xlu1 %667, %v674_v32   ;;  %v680_v38 = vpop.eup %679 }
 0x149   :  { %v682_v39 = vpop.eup %681 }
 0x14a   :  { %v684_v40 = vpop.eup %683 }
 0x14c   :  { %215 = vperm.xlu1 %667, %v676_v35  }
 0x150   :  { %218 = vperm.xlu1 %667, %v678_v37  }
 0x154   :  { %221 = vperm.xlu1 %667, %v680_v38  }
 0x158   :  { %224 = vperm.xlu1 %667, %v682_v39  }
 0x15c   :  { %227 = vperm.xlu1 %667, %v684_v40  }
 0x1c3   :  { %v207_v41 = vpop.permute.xlu1 %206 }
 0x1c4   :  { %v210_v45 = vpop.permute.xlu0 %209  ;;  %v232_v48 = vrot.slane %v207_v41, %v788_v30 }
 0x1c5   :  { %v236_v47 = vrot.slane %v210_v45, %v788_v30 }
 0x1c7   :  { %v213_v42 = vpop.permute.xlu1 %212  ;;  %v261_v53 = vsel %vm113_vm1, %v236_v47, %v232_v48 }
 0x1c8   :  { %v240_v49 = vrot.slane %v213_v42, %v788_v30 }
 0x1ca   :  { %v262_v59 = vsel %vm115_vm2, %v240_v49, %v261_v53 }
 0x1cb   :  { %v216_v43 = vpop.permute.xlu1 %215 }
 0x1cc   :  { %v244_v50 = vrot.slane %v216_v43, %v788_v30 }
 0x1ce   :  { %v263_v61 = vsel %vm117_vm3, %v244_v50, %v262_v59 }
 0x1cf   :  { %v219_v44 = vpop.permute.xlu1 %218 }
 0x1d0   :  { %v248_v51 = vrot.slane %v219_v44, %v788_v30 }
 0x1d2   :  { %v264_v63 = vsel %vm119_vm4, %v248_v51, %v263_v61 }
 0x1d3   :  { %v222_v46 = vpop.permute.xlu1 %221 }
 0x1d4   :  { %v252_v58 = vrot.slane %v222_v46, %v788_v30 }
 0x1d6   :  { %v265_v3 = vsel %vm121_vm5, %v252_v58, %v264_v63 }
 0x1d7   :  { %v225_v52 = vpop.permute.xlu1 %224 }
 0x1d8   :  { %v256_v60 = vrot.slane %v225_v52, %v788_v30 }
 0x1da   :  { %v266_v7 = vsel %vm123_vm6, %v256_v60, %v265_v3 }
 0x1db   :  { %v228_v1 = vpop.permute.xlu1 %227 }
 0x1dc   :  { %v260_v4 = vrot.slane %v228_v1, %v788_v30 }
 0x1de   :  { %v267_v8 = vsel %vm125_vm7, %v260_v4, %v266_v7 }
 0x1df   :  { %v269_v12 = vsel %vm128_vm8, %v267_v8, 0.0 }
 0x1e0   :  { %270 = vadd.xlane.f32.xlu1 %v269_v12 }
 0x26d   :  { %v271_v13 = vpop.xlane.xlu1 %270 }
 0x26e   :  { %685 = vrcp.f32 %v271_v13 }
 0x278   :  { %v686_v14 = vpop.eup %685 }
 0x279   :  { %v277_v16 = vrot.slane %v686_v14, %v135_v54  ;;  %v281_v20 = vrot.slane %v686_v14, %v139_v55  ;;  %v285_v30 = vrot.slane %v686_v14, %v143_v56  ;;  %v289_v24 = vrot.slane %v686_v14, %v147_v57 }
 0x27a   :  { %v293_v29 = vrot.slane %v686_v14, %v151_v62  ;;  %v297_v55 = vrot.slane %v686_v14, %v155_v11  ;;  %v301_v56 = vrot.slane %v686_v14, %v159_v15  ;;  %v305_v57 = vrot.slane %v686_v14, %v163_v21  ;;  %v426_v62 = vld [vmem:[%s922_s2] sm:$0xff]  ;;  %v427_v11 = vld [vmem:[%s922_s2 + $0x8] sm:$0xff]  ;;  %v428_v15 = vld [vmem:[%s922_s2 + $0x10] sm:$0xff] }
 0x27b   :  { %v314_v19 = vmul.f32 %v670_v25, %v277_v16  ;;  %v315_v22 = vmul.f32 %v672_v26, %v281_v20  ;;  %v316_v23 = vmul.f32 %v674_v32, %v285_v30  ;;  %v317_v28 = vmul.f32 %v676_v35, %v289_v24  ;;  %v525_v35 = vld [vmem:[%s923_s4] sm:$0xff] }
 0x27c   :  { %v318_v54 = vmul.f32 %v678_v37, %v293_v29  ;;  %v319_v25 = vmul.f32 %v680_v38, %v297_v55  ;;  %v320_v26 = vmul.f32 %v682_v39, %v301_v56  ;;  %v321_v31 = vmul.f32 %v684_v40, %v305_v57 }
 0x27d   :  { %324 = vperm.xlu0 %668, %v314_v19   ;;  %v688_v32 = vmov 0.0|0.0   ;;  %v652_v33 = vpack.c.bf16 %v427_v11, %v426_v62  ;;  %v690_v21 = vmov 0.0   ;;  %v655_v34 = vpack.c.bf16 %v429_v27, %v428_v15 }
 0x27e   :  { %651 = vmatprep.subr.bf16.mxu0 %v688_v32  ;;  %637 = vmatprep.mubr.msk.f32.mxu0 %vm689_vm9, %v690_v21  ;;  %v658_v37 = vpack.c.bf16 %v526_v36, %v525_v35 }
 0x27f   :  { %657 = vmatprep.subr.bf16.mxu1 %v688_v32  ;;  %648 = vmatprep.mubr.msk.f32.mxu1 %vm689_vm9, %v690_v21 }
 0x280   :  { %653 = vmatpush3.bf16.msra.mxu0 %v652_v33  ;;  %659 = vmatpush3.bf16.msra.mxu1 %v658_v37 }
 0x281   :  { %329 = vperm.xlu0 %668, %v315_v22   ;;  %654 = vmatprep.subr.bf16.mxu0 %v688_v32 }
 0x282   :  { %660 = vmatprep.subr.bf16.mxu1 %v688_v32 }
 0x284   :  { %656 = vmatpush3.bf16.msra.mxu0 %v655_v34 }
 0x285   :  { %334 = vperm.xlu0 %668, %v316_v23  }
 0x289   :  { %339 = vperm.xlu0 %668, %v317_v28  }
 0x28d   :  { %344 = vperm.xlu0 %668, %v318_v54  }
 0x291   :  { %349 = vperm.xlu0 %668, %v319_v25  }
 0x295   :  { %354 = vperm.xlu0 %668, %v320_v26  }
 0x299   :  { %359 = vperm.xlu0 %668, %v321_v31  }
 0x2fc   :  { %v325_v38 = vpop.permute.xlu0 %324 }
 0x2fd   :  { %v362_v42 = vmul.f32 %v325_v38, %v729_v0 }
 0x2ff   :  { %v370_v47 = vsel %vm46_vm0, %v362_v42, 0.0 }
 0x300   :  { %v330_v39 = vpop.permute.xlu0 %329  ;;  %v371_v52 = vrot.slane %v370_v47, 4 }
 0x301   :  { %v363_v40 = vmul.f32 %v330_v39, %v744_v5 }
 0x302   :  { %v372_v60 = vadd.f32 %v371_v52, %v370_v47 }
 0x303   :  { %v377_v44 = vsel %vm46_vm0, %v363_v40, 0.0 }
 0x304   :  { %v335_v41 = vpop.permute.xlu0 %334  ;;  %v378_v49 = vrot.slane %v377_v44, 4  ;;  %v373_v12 = vrot.slane %v372_v60, 2 }
 0x305   :  { %v364_v43 = vmul.f32 %v335_v41, %v737_v2 }
 0x306   :  { %v379_v58 = vadd.f32 %v378_v49, %v377_v44  ;;  %v374_v24 = vadd.f32 %v373_v12, %v372_v60 }
 0x307   :  { %v384_v45 = vsel %vm46_vm0, %v364_v43, 0.0 }
 0x308   :  { %v340_v46 = vpop.permute.xlu0 %339  ;;  %v385_v50 = vrot.slane %v384_v45, 4 }
 0x309   :  { %v365_v48 = vmul.f32 %v340_v46, %v749_v6  ;;  %v380_v6 = vrot.slane %v379_v58, 2 }
 0x30a   :  { %v386_v2 = vadd.f32 %v385_v50, %v384_v45 }
 0x30b   :  { %v391_v51 = vsel %vm46_vm0, %v365_v48, 0.0  ;;  %v381_v20 = vadd.f32 %v380_v6, %v379_v58  ;;  %v615_v58 = vld [vmem:[%s924_s3] ss:$0 sm:$0xff] }
 0x30c   :  { %v392_v5 = vrot.slane %v391_v51, 4  ;;  %v345_v53 = vpop.permute.xlu0 %344  ;;  %v387_v7 = vrot.slane %v386_v2, 2 }
 0x30d   :  { %v366_v0 = vmul.f32 %v345_v53, %v756_v9  ;;  %v382_v56 = vrot.slane %v381_v20, 1  ;;  %v528_v53 = vld [vmem:[%s923_s4 + $0x18] sm:$0xff] }
 0x30e   :  { %v393_v61 = vadd.f32 %v392_v5, %v391_v51  ;;  %v388_v30 = vadd.f32 %v387_v7, %v386_v2  ;;  %v527_v5 = vld [vmem:[%s923_s4 + $0x10] sm:$0xff] }
 0x30f   :  { %v398_v59 = vsel %vm46_vm0, %v366_v0, 0.0  ;;  %v383_v27 = vadd.f32 %v382_v56, %v381_v20  ;;  %v661_v0 = vpack.c.bf16 %v528_v53, %v527_v5 }
 0x310   :  { %v399_v63 = vrot.slane %v398_v59, 4  ;;  %v350_v1 = vpop.permute.xlu0 %349  ;;  %v394_v13 = vrot.slane %v393_v61, 2  ;;  %v389_v31 = vrot.slane %v388_v30, 1 }
 0x311   :  { %v367_v3 = vmul.f32 %v350_v1, %v761_v10  ;;  %662 = vmatpush3.bf16.msra.mxu1 %v661_v0 }
 0x312   :  { %v400_v4 = vadd.f32 %v399_v63, %v398_v59  ;;  %v395_v28 = vadd.f32 %v394_v13, %v393_v61  ;;  %v390_v36 = vadd.f32 %v389_v31, %v388_v30  ;;  %v617_v63 = vld [vmem:[%s925_s5] ss:$0 sm:$0xff] }
 0x313   :  { %v405_v8 = vsel %vm46_vm0, %v367_v3, 0.0 }
 0x314   :  { %v406_v14 = vrot.slane %v405_v8, 4  ;;  %v355_v16 = vpop.permute.xlu0 %354  ;;  %v401_v9 = vrot.slane %v400_v4, 2  ;;  %v396_v11 = vrot.slane %v395_v28, 1 }
 0x315   :  { %v368_v19 = vmul.f32 %v355_v16, %v772_v17  ;;  %v375_v17 = vrot.slane %v374_v24, 1 }
 0x316   :  { %v407_v22 = vadd.f32 %v406_v14, %v405_v8  ;;  %v402_v55 = vadd.f32 %v401_v9, %v400_v4  ;;  %v397_v38 = vadd.f32 %v396_v11, %v395_v28 }
 0x317   :  { %v412_v23 = vsel %vm46_vm0, %v368_v19, 0.0  ;;  %v376_v37 = vadd.f32 %v375_v17, %v374_v24 }
 0x318   :  { %v408_v10 = vrot.slane %v407_v22, 2  ;;  %v413_v29 = vrot.slane %v412_v23, 4  ;;  %v360_v54 = vpop.permute.xlu0 %359  ;;  %v403_v33 = vrot.slane %v402_v55, 1 }
 0x319   :  { %v369_v25 = vmul.f32 %v360_v54, %v777_v18  ;;  %v445_v41 = vsel %vm113_vm1, %v383_v27, %v376_v37 }
 0x31a   :  { %v409_v26 = vadd.f32 %v408_v10, %v407_v22  ;;  %v414_v57 = vadd.f32 %v413_v29, %v412_v23  ;;  %v404_v40 = vadd.f32 %v403_v33, %v402_v55  ;;  %v446_v44 = vsel %vm115_vm2, %v390_v36, %v445_v41 }
 0x31b   :  { %v419_v62 = vsel %vm46_vm0, %v369_v25, 0.0  ;;  %v447_v46 = vsel %vm117_vm3, %v397_v38, %v446_v44 }
 0x31c   :  { %v415_v15 = vrot.slane %v414_v57, 2  ;;  %v420_v32 = vrot.slane %v419_v62, 4  ;;  %v410_v21 = vrot.slane %v409_v26, 1  ;;  %v448_v48 = vsel %vm119_vm4, %v404_v40, %v447_v46 }
 0x31e   :  { %v416_v34 = vadd.f32 %v415_v15, %v414_v57  ;;  %v421_v35 = vadd.f32 %v420_v32, %v419_v62  ;;  %v411_v42 = vadd.f32 %v410_v21, %v409_v26 }
 0x320   :  { %v417_v39 = vrot.slane %v416_v34, 1  ;;  %v422_v18 = vrot.slane %v421_v35, 2  ;;  %v449_v50 = vsel %vm121_vm5, %v411_v42, %v448_v48 }
 0x322   :  { %v423_v43 = vadd.f32 %v422_v18, %v421_v35  ;;  %v418_v45 = vadd.f32 %v417_v39, %v416_v34 }
 0x324   :  { %v424_v47 = vrot.slane %v423_v43, 1  ;;  %v450_v51 = vsel %vm123_vm6, %v418_v45, %v449_v50 }
 0x326   :  { %v425_v49 = vadd.f32 %v424_v47, %v423_v43 }
 0x328   :  { %v451_v52 = vsel %vm125_vm7, %v425_v49, %v450_v51 }
 0x329   :  { %638 = vmatmul.mubr.msk.f32.vlgmr.msra.gmra.mrb[0].mxu0 %vm46_vm0, %v451_v52 }
 0x3fc   :  { %v520_v2 = vpop.f32.mrb[0].mxu0 }
 0x3fd   :  { %v521_v59 = vadd.f32 %v615_v58, %v520_v2  ;;  %v639_v60 = vpop.f32.mrb[1].mxu0 }
 0x3ff   :  { %v524_v61 = vmax.f32 %v521_v59, 0.0 }
 0x401   :  { %649 = vmatmul.mubr.msk.f32.vlgmr.msra.gmra.mrb[0].mxu1 %vm46_vm0, %v524_v61 }
 0x4d4   :  { %v605_v1 = vpop.f32.mrb[0].mxu1 }
 0x4d5   :  { %v606_v3 = vadd.f32 %v617_v63, %v605_v1  ;;  %v650_v6 = vpop.f32.mrb[1].mxu1 }
 0x4d7   :  { %609 = vst [vmem:[%s926_s6] sm:$0xff] %v606_v3 }

</bundles_post_ra>
